<compile_context>
chip_gen: v7x
topology: tpu7x:2x2x1
jax: 0.10.0
libtpu: 0.0.40
codegen_flags: <defaults>
</compile_context>

<pallas_src>
import functools

import jax
import jax.numpy as jnp
from jax import lax
from jax.experimental import pallas as pl
from jax.experimental.pallas import tpu as pltpu

LANE = 128      # lane width of a vreg
SUBLANE = 8     # f32 sublanes of a vreg
VREG_ELEMS = SUBLANE * LANE            # 1024 elements per whole vreg
TR = 512        # rows per grid block: 512*128*4 B = 256 KiB; x+out double-buffered ~1 MiB
                # -> comfortably inside v7x's 64 MiB VMEM (and v5e/v6e's 128 MiB).


def mlp_kernel(w1_ref, b1_ref, w2_ref, b2_ref, x_ref, o_ref):
    """Fused forward pass, entirely on the VPU, streamed in one-vreg chunks.

    w1_ref, b1_ref, w2_ref : [H] f32 in SMEM (scalar reads)
    b2_ref                 : [1] f32 in SMEM
    x_ref, o_ref           : [TR, 128] f32 in VMEM (batch N on the lane axis)
    """
    hidden = w1_ref.shape[0]
    # Hoist all 3*H + 1 SMEM scalar reads above the chunk loop.
    w1 = [w1_ref[j] for j in range(hidden)]
    b1 = [b1_ref[j] for j in range(hidden)]
    w2 = [w2_ref[j] for j in range(hidden)]
    b2 = b2_ref[0]

    n_chunks = x_ref.shape[0] // SUBLANE   # static

    def chunk_body(c, carry):
        r = pl.multiple_of(c * SUBLANE, SUBLANE)
        x = x_ref[pl.ds(r, SUBLANE), :]                       # one (8,128) vreg
        # j = 0, with the output bias folded in (saves one full-tile add).
        h = jnp.maximum(x * w1[0] + b1[0], 0.0)               # layer-1 (K=1) + ReLU
        acc = h * w2[0] + b2                                  # layer-2 reduction start
        # Static unroll over the remaining hidden units: a few VPU ops each, MXU idle.
        for j in range(1, hidden):
            h = jnp.maximum(x * w1[j] + b1[j], 0.0)
            acc = acc + w2[j] * h
        o_ref[pl.ds(r, SUBLANE), :] = acc.astype(o_ref.dtype)
        return carry

    lax.fori_loop(0, n_chunks, chunk_body, 0, unroll=False)


def _round_up(a, b):
    return ((a + b - 1) // b) * b


@functools.partial(jax.jit, static_argnames=())
def simple_mlp(x, w1, b1, w2, b2):
    """SimpleMLP forward. x: [N, 1]; w1: [1, H]; b1: [H]; w2: [H, 1]; b2: [1]."""
    n, in_features = x.shape
    assert in_features == 1, "kernel is specialized to the module's input_size=1"
    w1f = jnp.asarray(w1, jnp.float32).reshape(-1)    # [H]
    b1f = jnp.asarray(b1, jnp.float32).reshape(-1)    # [H]
    w2f = jnp.asarray(w2, jnp.float32).reshape(-1)    # [H]
    b2f = jnp.asarray(b2, jnp.float32).reshape(-1)    # [1]
    assert w1f.shape == b1f.shape == w2f.shape and b2f.shape == (1,), \
        "kernel is specialized to the module's output_size=1"

    # Lane-dense layout: flatten the batch onto the lane axis, pad to whole (8,128) vregs,
    # and (if gridded) to a whole number of TR-row blocks, so every tile is dense/aligned.
    rows_min = _round_up(pl.cdiv(n, LANE), SUBLANE)   # whole vregs
    tr = min(TR, rows_min)                            # block rows (multiple of 8)
    rows = _round_up(rows_min, tr)                    # whole blocks
    n_pad = rows * LANE
    grid_rows = rows // tr

    x_flat = jnp.asarray(x, jnp.float32).reshape(-1)
    if n_pad != n:                                    # statically skipped when exact
        x_flat = jnp.pad(x_flat, (0, n_pad - n))
    x2d = x_flat.reshape(rows, LANE)

    out2d = pl.pallas_call(
        mlp_kernel,
        out_shape=jax.ShapeDtypeStruct((rows, LANE), jnp.float32),
        grid=(grid_rows,),
        in_specs=[
            pl.BlockSpec(memory_space=pltpu.MemorySpace.SMEM),   # w1  [H]
            pl.BlockSpec(memory_space=pltpu.MemorySpace.SMEM),   # b1  [H]
            pl.BlockSpec(memory_space=pltpu.MemorySpace.SMEM),   # w2  [H]
            pl.BlockSpec(memory_space=pltpu.MemorySpace.SMEM),   # b2  [1]
            pl.BlockSpec((tr, LANE), lambda i: (i, 0)),          # x   block in VMEM
        ],
        out_specs=pl.BlockSpec((tr, LANE), lambda i: (i, 0)),
        compiler_params=pltpu.CompilerParams(
            # Batch axis is embarrassingly parallel: shards across v7x's 2 TensorCores,
            # harmless on single-TC v5e/v6e.
            dimension_semantics=("parallel",),
            # Budgeted for v7x (64 MiB physical VMEM); our double-buffered blocks use ~1 MiB.
            vmem_limit_bytes=32 * 1024 * 1024,
        ),
    )(w1f, b1f, w2f, b2f, x2d)

    # Drop padded lanes (statically skipped when exact) and restore the [N, 1] shape.
    out_flat = out2d.reshape(-1)
    if n_pad != n:
        out_flat = out_flat[:n]
    return out_flat.reshape(n, 1).astype(x.dtype)


def init_params(key, input_size, hidden_size, output_size):
    """Deterministic init mimicking nn.Linear: U(-1/sqrt(fan_in), 1/sqrt(fan_in))."""
    k1, k2, k3, k4 = jax.random.split(key, 4)
    bound1 = 1.0 / jnp.sqrt(jnp.float32(input_size))
    bound2 = 1.0 / jnp.sqrt(jnp.float32(hidden_size))
    w1 = jax.random.uniform(k1, (input_size, hidden_size), jnp.float32, -bound1, bound1)
    b1 = jax.random.uniform(k2, (hidden_size,), jnp.float32, -bound1, bound1)
    w2 = jax.random.uniform(k3, (hidden_size, output_size), jnp.float32, -bound2, bound2)
    b2 = jax.random.uniform(k4, (output_size,), jnp.float32, -bound2, bound2)
    return w1, b1, w2, b2


if __name__ == "__main__":
    input_size = 1
    hidden_size = 10
    output_size = 1
    n = 100  # matches train_X = torch.linspace(0, 1, 100).unsqueeze(-1)

    key = jax.random.PRNGKey(0)
    w1, b1, w2, b2 = init_params(key, input_size, hidden_size, output_size)

    x = jnp.linspace(0.0, 1.0, n, dtype=jnp.float32).reshape(n, input_size)

    out = jax.block_until_ready(simple_mlp(x, w1, b1, w2, b2))

    # Pure-JAX reference: relu(x @ W1 + b1) @ W2 + b2.
    ref = jnp.maximum(x @ w1 + b1[None, :], 0.0) @ w2 + b2[None, :]
    assert out.shape == (n, output_size)
    assert jnp.allclose(out, ref, atol=1e-5), "mismatch vs JAX reference"

    # Exercise the gridded / multi-block path (N spanning several TR=512-row blocks).
    n_big = 3 * TR * LANE + 777
    x_big = jnp.linspace(0.0, 1.0, n_big, dtype=jnp.float32).reshape(n_big, input_size)
    out_big = jax.block_until_ready(simple_mlp(x_big, w1, b1, w2, b2))
    ref_big = jnp.maximum(x_big @ w1 + b1[None, :], 0.0) @ w2 + b2[None, :]
    assert out_big.shape == (n_big, output_size)
    assert jnp.allclose(out_big, ref_big, atol=1e-5), "mismatch vs JAX reference (large N)"

    print("KERNEL_OK")
</pallas_src>

<mosaic_0001>
module attributes {stable_mosaic.version = 11 : i64} {
  func.func @mlp_kernel(%arg0: i32, %arg1: memref<10xf32, #tpu.memory_space<smem>>, %arg2: memref<10xf32, #tpu.memory_space<smem>>, %arg3: memref<10xf32, #tpu.memory_space<smem>>, %arg4: memref<1xf32, #tpu.memory_space<smem>>, %arg5: memref<8x128xf32, #tpu.memory_space<vmem>>, %arg6: memref<8x128xf32, #tpu.memory_space<vmem>>) attributes {dimension_semantics = [#tpu.dimension_semantics<parallel>], iteration_bounds = array<i64: 1>, scalar_prefetch = 0 : i64, scratch_operands = 0 : i64, tpu.core_type = #tpu.core_type<tc>, window_params = [{transform_indices = @transform_0, window_bounds = array<i64: 10>}, {transform_indices = @transform_1, window_bounds = array<i64: 10>}, {transform_indices = @transform_2, window_bounds = array<i64: 10>}, {transform_indices = @transform_3, window_bounds = array<i64: 1>}, {transform_indices = @transform_4, window_bounds = array<i64: 8, 128>}, {transform_indices = @transform_5, window_bounds = array<i64: 8, 128>}]} {
    %c0 = arith.constant 0 : index
    %0 = memref.load %arg1[%c0] : memref<10xf32, #tpu.memory_space<smem>>
    %c1 = arith.constant 1 : index
    %1 = memref.load %arg1[%c1] : memref<10xf32, #tpu.memory_space<smem>>
    %c2 = arith.constant 2 : index
    %2 = memref.load %arg1[%c2] : memref<10xf32, #tpu.memory_space<smem>>
    %c3 = arith.constant 3 : index
    %3 = memref.load %arg1[%c3] : memref<10xf32, #tpu.memory_space<smem>>
    %c4 = arith.constant 4 : index
    %4 = memref.load %arg1[%c4] : memref<10xf32, #tpu.memory_space<smem>>
    %c5 = arith.constant 5 : index
    %5 = memref.load %arg1[%c5] : memref<10xf32, #tpu.memory_space<smem>>
    %c6 = arith.constant 6 : index
    %6 = memref.load %arg1[%c6] : memref<10xf32, #tpu.memory_space<smem>>
    %c7 = arith.constant 7 : index
    %7 = memref.load %arg1[%c7] : memref<10xf32, #tpu.memory_space<smem>>
    %c8 = arith.constant 8 : index
    %8 = memref.load %arg1[%c8] : memref<10xf32, #tpu.memory_space<smem>>
    %c9 = arith.constant 9 : index
    %9 = memref.load %arg1[%c9] : memref<10xf32, #tpu.memory_space<smem>>
    %c0_0 = arith.constant 0 : index
    %10 = memref.load %arg2[%c0_0] : memref<10xf32, #tpu.memory_space<smem>>
    %c1_1 = arith.constant 1 : index
    %11 = memref.load %arg2[%c1_1] : memref<10xf32, #tpu.memory_space<smem>>
    %c2_2 = arith.constant 2 : index
    %12 = memref.load %arg2[%c2_2] : memref<10xf32, #tpu.memory_space<smem>>
    %c3_3 = arith.constant 3 : index
    %13 = memref.load %arg2[%c3_3] : memref<10xf32, #tpu.memory_space<smem>>
    %c4_4 = arith.constant 4 : index
    %14 = memref.load %arg2[%c4_4] : memref<10xf32, #tpu.memory_space<smem>>
    %c5_5 = arith.constant 5 : index
    %15 = memref.load %arg2[%c5_5] : memref<10xf32, #tpu.memory_space<smem>>
    %c6_6 = arith.constant 6 : index
    %16 = memref.load %arg2[%c6_6] : memref<10xf32, #tpu.memory_space<smem>>
    %c7_7 = arith.constant 7 : index
    %17 = memref.load %arg2[%c7_7] : memref<10xf32, #tpu.memory_space<smem>>
    %c8_8 = arith.constant 8 : index
    %18 = memref.load %arg2[%c8_8] : memref<10xf32, #tpu.memory_space<smem>>
    %c9_9 = arith.constant 9 : index
    %19 = memref.load %arg2[%c9_9] : memref<10xf32, #tpu.memory_space<smem>>
    %c0_10 = arith.constant 0 : index
    %20 = memref.load %arg3[%c0_10] : memref<10xf32, #tpu.memory_space<smem>>
    %c1_11 = arith.constant 1 : index
    %21 = memref.load %arg3[%c1_11] : memref<10xf32, #tpu.memory_space<smem>>
    %c2_12 = arith.constant 2 : index
    %22 = memref.load %arg3[%c2_12] : memref<10xf32, #tpu.memory_space<smem>>
    %c3_13 = arith.constant 3 : index
    %23 = memref.load %arg3[%c3_13] : memref<10xf32, #tpu.memory_space<smem>>
    %c4_14 = arith.constant 4 : index
    %24 = memref.load %arg3[%c4_14] : memref<10xf32, #tpu.memory_space<smem>>
    %c5_15 = arith.constant 5 : index
    %25 = memref.load %arg3[%c5_15] : memref<10xf32, #tpu.memory_space<smem>>
    %c6_16 = arith.constant 6 : index
    %26 = memref.load %arg3[%c6_16] : memref<10xf32, #tpu.memory_space<smem>>
    %c7_17 = arith.constant 7 : index
    %27 = memref.load %arg3[%c7_17] : memref<10xf32, #tpu.memory_space<smem>>
    %c8_18 = arith.constant 8 : index
    %28 = memref.load %arg3[%c8_18] : memref<10xf32, #tpu.memory_space<smem>>
    %c9_19 = arith.constant 9 : index
    %29 = memref.load %arg3[%c9_19] : memref<10xf32, #tpu.memory_space<smem>>
    %c0_20 = arith.constant 0 : index
    %30 = memref.load %arg4[%c0_20] : memref<1xf32, #tpu.memory_space<smem>>
    %c0_i32 = arith.constant 0 : i32
    %c8_i32 = arith.constant 8 : i32
    %31 = arith.muli %c0_i32, %c8_i32 : i32
    %32 = tpu.assume_multiple %31, 8 : i32
    %33 = arith.index_cast %32 : i32 to index
    %c0_21 = arith.constant 0 : index
    %34 = vector.load %arg5[%33, %c0_21] : memref<8x128xf32, #tpu.memory_space<vmem>>, vector<8x128xf32>
    %35 = vector.broadcast %0 : f32 to vector<8x128xf32>
    %36 = arith.mulf %34, %35 : vector<8x128xf32>
    %37 = vector.broadcast %10 : f32 to vector<8x128xf32>
    %38 = arith.addf %36, %37 : vector<8x128xf32>
    %cst = arith.constant 0.000000e+00 : f32
    %39 = vector.broadcast %cst : f32 to vector<8x128xf32>
    %40 = arith.maximumf %38, %39 : vector<8x128xf32>
    %41 = vector.broadcast %20 : f32 to vector<8x128xf32>
    %42 = arith.mulf %40, %41 : vector<8x128xf32>
    %43 = vector.broadcast %30 : f32 to vector<8x128xf32>
    %44 = arith.addf %42, %43 : vector<8x128xf32>
    %45 = vector.broadcast %1 : f32 to vector<8x128xf32>
    %46 = arith.mulf %34, %45 : vector<8x128xf32>
    %47 = vector.broadcast %11 : f32 to vector<8x128xf32>
    %48 = arith.addf %46, %47 : vector<8x128xf32>
    %cst_22 = arith.constant 0.000000e+00 : f32
    %49 = vector.broadcast %cst_22 : f32 to vector<8x128xf32>
    %50 = arith.maximumf %48, %49 : vector<8x128xf32>
    %51 = vector.broadcast %21 : f32 to vector<8x128xf32>
    %52 = arith.mulf %51, %50 : vector<8x128xf32>
    %53 = arith.addf %44, %52 : vector<8x128xf32>
    %54 = vector.broadcast %2 : f32 to vector<8x128xf32>
    %55 = arith.mulf %34, %54 : vector<8x128xf32>
    %56 = vector.broadcast %12 : f32 to vector<8x128xf32>
    %57 = arith.addf %55, %56 : vector<8x128xf32>
    %cst_23 = arith.constant 0.000000e+00 : f32
    %58 = vector.broadcast %cst_23 : f32 to vector<8x128xf32>
    %59 = arith.maximumf %57, %58 : vector<8x128xf32>
    %60 = vector.broadcast %22 : f32 to vector<8x128xf32>
    %61 = arith.mulf %60, %59 : vector<8x128xf32>
    %62 = arith.addf %53, %61 : vector<8x128xf32>
    %63 = vector.broadcast %3 : f32 to vector<8x128xf32>
    %64 = arith.mulf %34, %63 : vector<8x128xf32>
    %65 = vector.broadcast %13 : f32 to vector<8x128xf32>
    %66 = arith.addf %64, %65 : vector<8x128xf32>
    %cst_24 = arith.constant 0.000000e+00 : f32
    %67 = vector.broadcast %cst_24 : f32 to vector<8x128xf32>
    %68 = arith.maximumf %66, %67 : vector<8x128xf32>
    %69 = vector.broadcast %23 : f32 to vector<8x128xf32>
    %70 = arith.mulf %69, %68 : vector<8x128xf32>
    %71 = arith.addf %62, %70 : vector<8x128xf32>
    %72 = vector.broadcast %4 : f32 to vector<8x128xf32>
    %73 = arith.mulf %34, %72 : vector<8x128xf32>
    %74 = vector.broadcast %14 : f32 to vector<8x128xf32>
    %75 = arith.addf %73, %74 : vector<8x128xf32>
    %cst_25 = arith.constant 0.000000e+00 : f32
    %76 = vector.broadcast %cst_25 : f32 to vector<8x128xf32>
    %77 = arith.maximumf %75, %76 : vector<8x128xf32>
    %78 = vector.broadcast %24 : f32 to vector<8x128xf32>
    %79 = arith.mulf %78, %77 : vector<8x128xf32>
    %80 = arith.addf %71, %79 : vector<8x128xf32>
    %81 = vector.broadcast %5 : f32 to vector<8x128xf32>
    %82 = arith.mulf %34, %81 : vector<8x128xf32>
    %83 = vector.broadcast %15 : f32 to vector<8x128xf32>
    %84 = arith.addf %82, %83 : vector<8x128xf32>
    %cst_26 = arith.constant 0.000000e+00 : f32
    %85 = vector.broadcast %cst_26 : f32 to vector<8x128xf32>
    %86 = arith.maximumf %84, %85 : vector<8x128xf32>
    %87 = vector.broadcast %25 : f32 to vector<8x128xf32>
    %88 = arith.mulf %87, %86 : vector<8x128xf32>
    %89 = arith.addf %80, %88 : vector<8x128xf32>
    %90 = vector.broadcast %6 : f32 to vector<8x128xf32>
    %91 = arith.mulf %34, %90 : vector<8x128xf32>
    %92 = vector.broadcast %16 : f32 to vector<8x128xf32>
    %93 = arith.addf %91, %92 : vector<8x128xf32>
    %cst_27 = arith.constant 0.000000e+00 : f32
    %94 = vector.broadcast %cst_27 : f32 to vector<8x128xf32>
    %95 = arith.maximumf %93, %94 : vector<8x128xf32>
    %96 = vector.broadcast %26 : f32 to vector<8x128xf32>
    %97 = arith.mulf %96, %95 : vector<8x128xf32>
    %98 = arith.addf %89, %97 : vector<8x128xf32>
    %99 = vector.broadcast %7 : f32 to vector<8x128xf32>
    %100 = arith.mulf %34, %99 : vector<8x128xf32>
    %101 = vector.broadcast %17 : f32 to vector<8x128xf32>
    %102 = arith.addf %100, %101 : vector<8x128xf32>
    %cst_28 = arith.constant 0.000000e+00 : f32
    %103 = vector.broadcast %cst_28 : f32 to vector<8x128xf32>
    %104 = arith.maximumf %102, %103 : vector<8x128xf32>
    %105 = vector.broadcast %27 : f32 to vector<8x128xf32>
    %106 = arith.mulf %105, %104 : vector<8x128xf32>
    %107 = arith.addf %98, %106 : vector<8x128xf32>
    %108 = vector.broadcast %8 : f32 to vector<8x128xf32>
    %109 = arith.mulf %34, %108 : vector<8x128xf32>
    %110 = vector.broadcast %18 : f32 to vector<8x128xf32>
    %111 = arith.addf %109, %110 : vector<8x128xf32>
    %cst_29 = arith.constant 0.000000e+00 : f32
    %112 = vector.broadcast %cst_29 : f32 to vector<8x128xf32>
    %113 = arith.maximumf %111, %112 : vector<8x128xf32>
    %114 = vector.broadcast %28 : f32 to vector<8x128xf32>
    %115 = arith.mulf %114, %113 : vector<8x128xf32>
    %116 = arith.addf %107, %115 : vector<8x128xf32>
    %117 = vector.broadcast %9 : f32 to vector<8x128xf32>
    %118 = arith.mulf %34, %117 : vector<8x128xf32>
    %119 = vector.broadcast %19 : f32 to vector<8x128xf32>
    %120 = arith.addf %118, %119 : vector<8x128xf32>
    %cst_30 = arith.constant 0.000000e+00 : f32
    %121 = vector.broadcast %cst_30 : f32 to vector<8x128xf32>
    %122 = arith.maximumf %120, %121 : vector<8x128xf32>
    %123 = vector.broadcast %29 : f32 to vector<8x128xf32>
    %124 = arith.mulf %123, %122 : vector<8x128xf32>
    %125 = arith.addf %116, %124 : vector<8x128xf32>
    %126 = arith.index_cast %32 : i32 to index
    %c0_31 = arith.constant 0 : index
    %127 = vector.load %arg6[%126, %c0_31] : memref<8x128xf32, #tpu.memory_space<vmem>>, vector<8x128xf32>
    tpu.vector_store %arg6[%126, %c0_31], %125 {strides = array<i32>} : memref<8x128xf32, #tpu.memory_space<vmem>>, vector<8x128xf32>,
    %c1_i32 = arith.constant 1 : i32
    return
  }
  func.func @transform_0(%arg0: i32) -> i32 {
    %c0_i32 = arith.constant 0 : i32
    %c0_i32_0 = arith.constant 0 : i32
    return %c0_i32 : i32
  }
  func.func @transform_1(%arg0: i32) -> i32 {
    %c0_i32 = arith.constant 0 : i32
    %c0_i32_0 = arith.constant 0 : i32
    return %c0_i32 : i32
  }
  func.func @transform_2(%arg0: i32) -> i32 {
    %c0_i32 = arith.constant 0 : i32
    %c0_i32_0 = arith.constant 0 : i32
    return %c0_i32 : i32
  }
  func.func @transform_3(%arg0: i32) -> i32 {
    %c0_i32 = arith.constant 0 : i32
    %c0_i32_0 = arith.constant 0 : i32
    return %c0_i32 : i32
  }
  func.func @transform_4(%arg0: i32) -> (i32, i32) {
    %c0_i32 = arith.constant 0 : i32
    %c0_i32_0 = arith.constant 0 : i32
    return %arg0, %c0_i32 : i32, i32
  }
  func.func @transform_5(%arg0: i32) -> (i32, i32) {
    %c0_i32 = arith.constant 0 : i32
    %c0_i32_0 = arith.constant 0 : i32
    return %arg0, %c0_i32 : i32, i32
  }
}

</mosaic_0001>

<bundles_post_ra>
// kernel: simple_mlp.1
= control target key start
LH: loop header
LB: loop body
LE: loop exit
PB: predicated region body
PF: predicated region fallthrough
CT: control target
= control target key end

     0   :  { %11 = vsyncpa [#allocation4], 0  ;;  %s376_s0 = inlined_call_operand.vmem [shape: f32[10], index: 0, kind: input, shape index: {}]   ;;  %s377_s1 = inlined_call_operand.vmem [shape: f32[10], index: 1, kind: input, shape index: {}]   ;;  %s378_s2 = inlined_call_operand.vmem [shape: f32[10], index: 2, kind: input, shape index: {}]   ;;  %s379_s3 = inlined_call_operand.<no memory space> [shape: f32[1], index: 3, kind: input, shape index: {}]   ;;  %s380_s4 = inlined_call_operand.vmem [shape: f32[8,128], index: 4, kind: input, shape index: {}]   ;;  %s381_s5 = inlined_call_operand.vmem [shape: f32[8,128], index: 5, kind: output, shape index: {}]  }
   0x1   :  { %12 = vsyncpa [#allocation6], 0  ;;  %s29_s20 = sshll.u32 %s377_s1, 4  ;;  %s19_s23 = sshll.u32 %s376_s0, 4  ;;  %s30_s20 = int_to_ptr.vmem [resolvable:$true] %s29_s20  ;;  %s20_s23 = int_to_ptr.vmem [resolvable:$true] %s19_s23 }
   0x2   :  { %s207_s24 = scalar_lea.vmem %s30_s20, 16  ;;  %p212_p1 = scmp.lt.s32.totalorder %s30_s20, %s30_s20 }
   0x3   :  { %p208_p0 = scmp.ne.s32.totalorder %s30_s20, %s207_s24  ;;  %p213_p2 = scmp.lt.s32.totalorder %s207_s24, %s207_s24 }
   0x5   :  { %p214_p3 = por %p213_p2, %p212_p1 }
   0x7   :  { %p215_p4 = pnand %p214_p3, %p208_p0 }
   0x9   :  { %218 = shalt.err (!%p215_p4)
}
   0xa   :  { %s247_s25 = smov [#allocation5]   ;;  %s219_s26 = scalar_lea.vmem %s20_s23, 16 }
   0xb   :  { %32 = dma.vmem_to_smem %s30_s20, 16, %s247_s25, [#allocation6]  }
   0xc   :  { %p220_p5 = scmp.ne.s32.totalorder %s20_s23, %s219_s26  ;;  %p224_p6 = scmp.lt.s32.totalorder %s20_s23, %s20_s23 }
   0xd   :  { %p225_p7 = scmp.lt.s32.totalorder %s219_s26, %s219_s26 }
   0xf   :  { %p226_p8 = por %p225_p7, %p224_p6 }
  0x11   :  { %p227_p9 = pnand %p226_p8, %p220_p5 }
  0x13   :  { %230 = shalt.err (!%p227_p9)
}
  0x14   :  { %s248_s1 = smov [#allocation3]   ;;  %s39_s28 = sshll.u32 %s378_s2, 4  ;;  %s40_s28 = int_to_ptr.vmem [resolvable:$true] %s39_s28 }
  0x15   :  { %22 = dma.vmem_to_smem %s20_s23, 16, %s248_s1, [#allocation4]  }
  0x16   :  { %s231_s29 = scalar_lea.vmem %s40_s28, 16  ;;  %p236_p11 = scmp.lt.s32.totalorder %s40_s28, %s40_s28 }
  0x17   :  { %p232_p10 = scmp.ne.s32.totalorder %s40_s28, %s231_s29  ;;  %p237_p12 = scmp.lt.s32.totalorder %s231_s29, %s231_s29 }
  0x19   :  { %p238_p13 = por %p237_p12, %p236_p11 }
  0x1b   :  { %p239_p0 = pnand %p238_p13, %p232_p10 }
  0x1d   :  { %242 = shalt.err (!%p239_p0)
}
  0x1e   :  { %s249_s30 = smov [#allocation7]  }
  0x1f   :  { %42 = dma.vmem_to_smem %s40_s28, 16, %s249_s30, [#allocation6]  }
  0x20   :  { %243 = dma.done.wait [#allocation4], 16  }
  0x21   :  { %244 = vsyncadd [#allocation4], 4294967280 }
  0x22   :  { %245 = dma.done.wait [#allocation6], 32  }
  0x23   :  { %246 = vsyncadd [#allocation6], 4294967264 }
  0x24   :  { %56 = sfence }
  0x25   :  { %s57_s6 = sld [smem:[#allocation3]]  ;;  %s177_s7 = sld [smem:[#allocation3 + $0x1]]  ;;  %v304_v0 = vld [vmem:[%s380_s4] sm:$0xff]  ;;  %v96_v11 = vstv %s379_s3 }
  0x26   :  { %s178_s8 = sld [smem:[#allocation3 + $0x2]]  ;;  %s179_s9 = sld [smem:[#allocation3 + $0x3]] }
  0x27   :  { %s180_s2 = sld [smem:[#allocation3 + $0x4]]  ;;  %s181_s10 = sld [smem:[#allocation3 + $0x5]] }
  0x28   :  { %s289_s11 = sld [smem:[#allocation3 + $0x6]]  ;;  %s291_s12 = sld [smem:[#allocation3 + $0x7]] }
  0x29   :  { %s293_s13 = sld [smem:[#allocation3 + $0x8]]  ;;  %s295_s14 = sld [smem:[#allocation3 + $0x9]] }
  0x2a   :  { %s297_s15 = sld [smem:[#allocation5]]  ;;  %s299_s16 = sld [smem:[#allocation5 + $0x1]] }
  0x2b   :  { %s306_s19 = sld [smem:[#allocation5 + $0x2]]  ;;  %s308_s20 = sld [smem:[#allocation5 + $0x3]]  ;;  %v89_v1 = vstv %s57_s6  ;;  %v98_v2 = vstv %s177_s7 }
  0x2c   :  { %s310_s21 = sld [smem:[#allocation5 + $0x4]]  ;;  %s312_s22 = sld [smem:[#allocation5 + $0x5]]  ;;  %v106_v3 = vstv %s178_s8  ;;  %v114_v4 = vstv %s179_s9  ;;  %v90_v5 = vmul.f32 %v89_v1, %v304_v0  ;;  %v99_v6 = vmul.f32 %v98_v2, %v304_v0 }
  0x2d   :  { %s314_s23 = sld [smem:[#allocation5 + $0x6]]  ;;  %v122_v7 = vstv %s180_s2  ;;  %v130_v8 = vstv %s181_s10  ;;  %s318_s4 = sld [smem:[#allocation5 + $0x7]]  ;;  %v107_v9 = vmul.f32 %v106_v3, %v304_v0  ;;  %v115_v10 = vmul.f32 %v114_v4, %v304_v0 }
  0x2e   :  { %s322_s24 = sld [smem:[#allocation7]]  ;;  %s324_s25 = sld [smem:[#allocation7 + $0x1]]  ;;  %v123_v12 = vmul.f32 %v122_v7, %v304_v0  ;;  %v131_v13 = vmul.f32 %v130_v8, %v304_v0  ;;  %v138_v16 = vstv %s289_s11  ;;  %v146_v17 = vstv %s291_s12 }
  0x2f   :  { %s331_s0 = sld [smem:[#allocation7 + $0x2]]  ;;  %s333_s27 = sld [smem:[#allocation7 + $0x3]]  ;;  %v139_v28 = vmul.f32 %v138_v16, %v304_v0  ;;  %v147_v29 = vmul.f32 %v146_v17, %v304_v0  ;;  %v154_v32 = vstv %s293_s13  ;;  %v162_v33 = vstv %s295_s14 }
  0x30   :  { %v91_v14 = vstv %s297_s15  ;;  %v100_v15 = vstv %s299_s16  ;;  %s339_s28 = sld [smem:[#allocation5 + $0x8]]  ;;  %s341_s29 = sld [smem:[#allocation7 + $0x4]]  ;;  %v155_v44 = vmul.f32 %v154_v32, %v304_v0  ;;  %v163_v51 = vmul.f32 %v162_v33, %v304_v0 }
  0x31   :  { %v92_v18 = vadd.f32 %v91_v14, %v90_v5  ;;  %v101_v19 = vadd.f32 %v100_v15, %v99_v6  ;;  %v108_v20 = vstv %s306_s19  ;;  %v116_v21 = vstv %s308_s20  ;;  %s347_s3 = sld [smem:[#allocation5 + $0x9]]  ;;  %s349_s30 = sld [smem:[#allocation7 + $0x5]] }
  0x32   :  { %v109_v22 = vadd.f32 %v108_v20, %v107_v9  ;;  %v117_v23 = vadd.f32 %v116_v21, %v115_v10  ;;  %v124_v24 = vstv %s310_s21  ;;  %v132_v25 = vstv %s312_s22  ;;  %s355_s6 = sld [smem:[#allocation7 + $0x6]]  ;;  %s361_s7 = sld [smem:[#allocation7 + $0x7]] }
  0x33   :  { %v93_v26 = vmax.f32 %v92_v18, 0.0  ;;  %v102_v27 = vmax.f32 %v101_v19, 0.0  ;;  %v125_v31 = vadd.f32 %v124_v24, %v123_v12  ;;  %v133_v36 = vadd.f32 %v132_v25, %v131_v13  ;;  %s202_s8 = sld [smem:[#allocation7 + $0x8]]  ;;  %s203_s9 = sld [smem:[#allocation7 + $0x9]] }
  0x34   :  { %v110_v30 = vmax.f32 %v109_v22, 0.0  ;;  %v94_v34 = vstv %s322_s24  ;;  %v103_v35 = vstv %s324_s25  ;;  %v140_v37 = vstv %s314_s23 }
  0x35   :  { %v95_v38 = vmul.f32 %v94_v34, %v93_v26  ;;  %v104_v39 = vmul.f32 %v103_v35, %v102_v27  ;;  %v111_v40 = vstv %s331_s0  ;;  %v118_v41 = vmax.f32 %v117_v23, 0.0 }
  0x36   :  { %v119_v42 = vstv %s333_s27  ;;  %v148_v43 = vstv %s318_s4  ;;  %v112_v46 = vmul.f32 %v111_v40, %v110_v30  ;;  %v126_v47 = vmax.f32 %v125_v31, 0.0 }
  0x37   :  { %v97_v45 = vadd.f32 %v96_v11, %v95_v38  ;;  %v141_v48 = vadd.f32 %v140_v37, %v139_v28  ;;  %v127_v49 = vstv %s341_s29  ;;  %v156_v50 = vstv %s339_s28 }
  0x38   :  { %v120_v53 = vmul.f32 %v119_v42, %v118_v41  ;;  %v134_v54 = vmax.f32 %v133_v36, 0.0  ;;  %v149_v55 = vadd.f32 %v148_v43, %v147_v29  ;;  %v135_v56 = vstv %s349_s30 }
  0x39   :  { %v105_v52 = vadd.f32 %v104_v39, %v97_v45  ;;  %v164_v57 = vstv %s347_s3  ;;  %v128_v59 = vmul.f32 %v127_v49, %v126_v47  ;;  %v142_v60 = vmax.f32 %v141_v48, 0.0 }
  0x3a   :  { %v157_v61 = vadd.f32 %v156_v50, %v155_v44  ;;  %v143_v62 = vstv %s355_s6  ;;  %v136_v1 = vmul.f32 %v135_v56, %v134_v54  ;;  %v150_v2 = vmax.f32 %v149_v55, 0.0 }
  0x3b   :  { %v113_v58 = vadd.f32 %v112_v46, %v105_v52  ;;  %v165_v3 = vadd.f32 %v164_v57, %v163_v51  ;;  %v151_v4 = vstv %s361_s7  ;;  %v144_v0 = vmul.f32 %v143_v62, %v142_v60 }
  0x3c   :  { %v158_v6 = vmax.f32 %v157_v61, 0.0  ;;  %v159_v7 = vstv %s202_s8  ;;  %v152_v9 = vmul.f32 %v151_v4, %v150_v2  ;;  %v167_v11 = vstv %s203_s9 }
  0x3d   :  { %v121_v63 = vadd.f32 %v120_v53, %v113_v58  ;;  %v166_v10 = vmax.f32 %v165_v3, 0.0 }
  0x3e   :  { %v160_v13 = vmul.f32 %v159_v7, %v158_v6 }
  0x3f   :  { %v129_v5 = vadd.f32 %v128_v59, %v121_v63  ;;  %v168_v15 = vmul.f32 %v167_v11, %v166_v10 }
  0x41   :  { %v137_v8 = vadd.f32 %v136_v1, %v129_v5 }
  0x43   :  { %v145_v12 = vadd.f32 %v144_v0, %v137_v8 }
  0x45   :  { %v153_v14 = vadd.f32 %v152_v9, %v145_v12 }
  0x47   :  { %v161_v16 = vadd.f32 %v160_v13, %v153_v14 }
  0x49   :  { %v169_v17 = vadd.f32 %v168_v15, %v161_v16 }
  0x4b   :  { %170 = vst [vmem:[%s381_s5] sm:$0xff] %v169_v17 }
  0x4c   :  { %175 = vsyncpa [#allocation4], 1 }
  0x4d   :  { %176 = vsyncpa [#allocation6], 1 }

</bundles_post_ra>
